<compile_context>
chip_gen: v6e
topology: v6e:2x2x1
jax: 0.10.0
libtpu: 0.0.40
codegen_flags: <defaults>
</compile_context>

<pallas_src>
import math
import functools

import numpy as np
import jax
import jax.numpy as jnp
from jax import lax
from jax.experimental import pallas as pl
from jax.experimental.pallas import tpu as pltpu


# --------------------------------------------------------------------------------------
# Kernel
# --------------------------------------------------------------------------------------
def _mha_kernel(x_ref, end_ref, wqkv_ref, bqkv_ref, wo_ref, bo_ref, o_ref,
                qkv_scr, ctx_scr,
                *, t_in, seq_len, num_heads, head_dim, window, block_b, kv_tile):
    """One grid step = `block_b` batch elements. Full MHA (proj -> attn -> out-proj) in-kernel."""
    E = wo_ref.shape[0]
    L = seq_len
    BtL = block_b * L
    n_kv = L // kv_tile

    # ---- fused QKV projection: one (Bt*L, E) @ (E, 3E) MXU matmul (bf16 in, f32 accum).
    # Softmax scale is already folded into the Q columns of wqkv / bqkv by the wrapper;
    # the input block arrives in bf16 (cast in the wrapper to halve DMA bytes).
    qkv = jnp.dot(x_ref[...], wqkv_ref[...],
                  preferred_element_type=jnp.float32) + bqkv_ref[...]
    qkv_scr[...] = qkv.reshape(block_b, L, 3 * E).astype(jnp.bfloat16)

    # ---- additive float window bias (PyTorch float attn_mask is ADDED to the logits),
    # ONE vectorized broadcasted compare for the whole block: shape (Bt, 1, L).
    pos = lax.broadcasted_iota(jnp.int32, (1, 1, L), 2)
    seg_pos = jnp.where(pos >= t_in, pos - t_in, pos)
    e = end_ref[...]                                                  # (Bt, 1, 1) int32
    bias = jnp.logical_and(seg_pos >= e - window, seg_pos < e).astype(jnp.float32)

    # ---- per-head attention, key-tiled with an online (flash-style) softmax so the f32
    # score temporaries are bounded to (Bt, L, kv_tile) regardless of L.
    for h in range(num_heads):                     # static unroll (see TODO for large H)
        lo = h * head_dim
        qh = qkv_scr[:, :, lo:lo + head_dim]                          # (Bt, L, D) bf16
        m_i = None
        l_i = None
        acc = None
        for t in range(n_kv):                      # static unroll over key tiles
            ks = t * kv_tile
            kh = qkv_scr[:, ks:ks + kv_tile, E + lo:E + lo + head_dim]
            vh = qkv_scr[:, ks:ks + kv_tile, 2 * E + lo:2 * E + lo + head_dim]
            s = jnp.einsum("bqd,bkd->bqk", qh, kh,
                           preferred_element_type=jnp.float32)        # (Bt, L, Tk) f32
            s = s + bias[:, :, ks:ks + kv_tile]
            if t == 0:
                m_i = jnp.max(s, axis=-1, keepdims=True)
                p = jnp.exp(s - m_i)
                l_i = jnp.sum(p, axis=-1, keepdims=True)
                acc = jnp.einsum("bqk,bkd->bqd", p.astype(jnp.bfloat16), vh,
                                 preferred_element_type=jnp.float32)
            else:
                m_new = jnp.maximum(m_i, jnp.max(s, axis=-1, keepdims=True))
                alpha = jnp.exp(m_i - m_new)
                p = jnp.exp(s - m_new)
                l_i = alpha * l_i + jnp.sum(p, axis=-1, keepdims=True)
                acc = alpha * acc + jnp.einsum("bqk,bkd->bqd",
                                               p.astype(jnp.bfloat16), vh,
                                               preferred_element_type=jnp.float32)
                m_i = m_new
        ctx = acc * pl.reciprocal(l_i, approx=True)                    # (Bt, L, D) f32
        ctx_scr[:, :, lo:lo + head_dim] = ctx.astype(jnp.bfloat16)

    # ---- ONE fused out-projection: (Bt*L, E) @ (E, E), K = E (not head_dim).
    out = jnp.dot(ctx_scr[...].reshape(BtL, E), wo_ref[...],
                  preferred_element_type=jnp.float32) + bo_ref[...]
    o_ref[...] = out.astype(o_ref.dtype)


# --------------------------------------------------------------------------------------
# Sizing helpers (VMEM-budget aware)
# --------------------------------------------------------------------------------------
def _vmem_capacity_bytes():
    try:
        return int(pltpu.get_tpu_info().vmem_capacity_bytes)
    except Exception:
        return 64 * 1024 * 1024          # conservative fallback (v7x physical per-core VMEM)


def _pick_kv_tile(L, target=512):
    if L <= target:
        return L
    best = 1
    for t in range(target, 0, -1):
        if L % t == 0:
            best = t
            break
    return L if best < 128 else best


def _vmem_estimate(bb, L, E, head_dim, kv_tile, out_bytes):
    """Rough per-step VMEM use (bytes) for a given batch block size."""
    btl = bb * L
    w = (E * 3 * E + E * E) * 2 + 4 * E * 4            # single-buffered weights + biases
    io = btl * E * 2 * 2 + btl * E * out_bytes * 2     # in (bf16) + out, double-buffered
    scr = btl * 3 * E * 2 + btl * E * 2                # qkv + ctx scratch (bf16)
    tmp = btl * 3 * E * 4                              # f32 qkv projection result
    tmp += bb * L * kv_tile * 4 * 3                    # score / prob f32 temporaries
    tmp += bb * L * (head_dim + 2) * 4 * 2             # online softmax running state
    return w + io + scr + tmp


def _pick_block_b(B, L, E, head_dim, kv_tile, out_bytes, budget):
    # >= 2 grid steps per v7x TensorCore when the batch allows it, else keep grid >= 2.
    max_bb = max(1, B // 4) if B >= 4 else max(1, B // 2)
    best = 1
    for bb in range(1, max_bb + 1):
        if B % bb:
            continue
        if (bb * L) % 8 and bb != B:                   # (8, 128) layout rule on the row block
            continue
        if _vmem_estimate(bb, L, E, head_dim, kv_tile, out_bytes) <= budget:
            best = bb
    if (best * L) % 8 and best != B:                   # layout fallback: one full-batch step
        best = B
    return best


# --------------------------------------------------------------------------------------
# Wrapper
# --------------------------------------------------------------------------------------
def prepare_params(params, num_heads):
    """One-time weight prep (transpose, softmax-scale fold, bf16 cast). Hoisted out of the
    per-call wrapper so it is not re-done on every forward."""
    w_in = jnp.asarray(params["in_proj_weight"], jnp.float32)
    b_in = jnp.asarray(params["in_proj_bias"], jnp.float32)
    w_out = jnp.asarray(params["out_proj_weight"], jnp.float32)
    b_out = jnp.asarray(params["out_proj_bias"], jnp.float32)
    E = w_out.shape[0]
    head_dim = E // num_heads
    scale = 1.0 / math.sqrt(head_dim)
    wqkv_t = w_in.T
    wqkv_t = wqkv_t.at[:, :E].multiply(scale)          # fold 1/sqrt(d) into Q projection
    bqkv = b_in.at[:E].multiply(scale)[None, :]
    return {
        "wqkv": wqkv_t.astype(jnp.bfloat16),           # (E, 3E) bf16
        "bqkv": bqkv.astype(jnp.float32),              # (1, 3E) f32
        "wo": w_out.T.astype(jnp.bfloat16),            # (E, E)  bf16
        "bo": b_out[None, :].astype(jnp.float32),      # (1, E)  f32
    }


def conditioned_sparse_attention(x, condition, end_inds, prepared, *,
                                 num_heads, attention_window,
                                 block_b=None, kv_tile=None):
    B, t_in, E = x.shape
    t_cond = condition.shape[1]
    L = t_in + t_cond
    head_dim = E // num_heads
    out_dtype = x.dtype
    out_bytes = jnp.dtype(out_dtype).itemsize

    # Flatten to 2D (B*L, E) (lane-dense output slab) and cast the input to bf16 in the
    # wrapper: halves the per-step input DMA bytes and the double-buffered block VMEM.
    inp2d = jnp.concatenate([x, condition], axis=1).reshape(B * L, E).astype(jnp.bfloat16)
    end3d = end_inds.astype(jnp.int32).reshape(B, 1, 1)

    if kv_tile is None:
        kv_tile = _pick_kv_tile(L)
    assert L % kv_tile == 0

    vmem_cap = _vmem_capacity_bytes()
    budget = int(vmem_cap * 0.7)                       # leave headroom for pipelining
    vmem_limit = int(vmem_cap * 0.9)

    if block_b is None:
        block_b = _pick_block_b(B, L, E, head_dim, kv_tile, out_bytes, budget)
    assert B % block_b == 0
    grid = B // block_b

    kernel = functools.partial(_mha_kernel, t_in=t_in, seq_len=L,
                               num_heads=num_heads, head_dim=head_dim,
                               window=attention_window, block_b=block_b,
                               kv_tile=kv_tile)

    const = pl.Buffered(1)                             # single-buffer the invariant weights
    grid_spec = pltpu.PrefetchScalarGridSpec(
        num_scalar_prefetch=0,
        grid=(grid,),
        in_specs=[
            pl.BlockSpec((block_b * L, E), lambda b: (b, 0)),          # flattened input (bf16)
            pl.BlockSpec((block_b, 1, 1), lambda b: (b, 0, 0)),        # end indices (int32)
            pl.BlockSpec((E, 3 * E), lambda b: (0, 0), pipeline_mode=const),   # in_proj W^T
            pl.BlockSpec((1, 3 * E), lambda b: (0, 0), pipeline_mode=const),   # in_proj bias
            pl.BlockSpec((E, E), lambda b: (0, 0), pipeline_mode=const),       # out_proj W^T
            pl.BlockSpec((1, E), lambda b: (0, 0), pipeline_mode=const),       # out_proj bias
        ],
        out_specs=pl.BlockSpec((block_b * L, E), lambda b: (b, 0)),
        scratch_shapes=[
            pltpu.VMEM((block_b, L, 3 * E), jnp.bfloat16),             # staged qkv
            pltpu.VMEM((block_b, L, E), jnp.bfloat16),                 # per-head context slab
        ],
    )
    out2d = pl.pallas_call(
        kernel,
        out_shape=jax.ShapeDtypeStruct((B * L, E), out_dtype),
        grid_spec=grid_spec,
        compiler_params=pltpu.CompilerParams(
            dimension_semantics=("parallel",),
            vmem_limit_bytes=vmem_limit,
        ),
    )(inp2d, end3d, prepared["wqkv"], prepared["bqkv"], prepared["wo"], prepared["bo"])

    # nn.MultiheadAttention(..., need_weights=False) returns (attn_output, None)
    return out2d.reshape(B, L, E), None


# --------------------------------------------------------------------------------------
# Pure-JAX reference (mirrors the PyTorch forward in eval mode, float attn_mask added)
# --------------------------------------------------------------------------------------
def _ref_forward(x, condition, end_inds, params, *, num_heads, attention_window):
    B, t_in, E = x.shape
    t_cond = condition.shape[1]
    L = t_in + t_cond
    head_dim = E // num_heads
    inp = jnp.concatenate([x, condition], axis=1)

    e = end_inds[:, None].astype(jnp.int32)
    input_idx = jnp.arange(t_in)[None, :]
    cond_idx = jnp.arange(t_cond)[None, :]
    input_mask = (((input_idx >= e - attention_window) & (input_idx < e)).astype(jnp.float32))
    cond_mask = (((cond_idx >= e - attention_window) & (cond_idx < e)).astype(jnp.float32))
    mask = jnp.concatenate([input_mask, cond_mask], axis=1)            # (B, L)

    qkv = inp @ params["in_proj_weight"].T + params["in_proj_bias"]    # (B, L, 3E)
    q, k, v = jnp.split(qkv, 3, axis=-1)

    def heads(t):
        return t.reshape(B, L, num_heads, head_dim).transpose(0, 2, 1, 3)

    q, k, v = heads(q), heads(k), heads(v)
    s = jnp.einsum("bhqd,bhkd->bhqk", q, k) / math.sqrt(head_dim)
    s = s + mask[:, None, None, :]
    p = jax.nn.softmax(s, axis=-1)
    ctx = jnp.einsum("bhqk,bhkd->bhqd", p, v).transpose(0, 2, 1, 3).reshape(B, L, E)
    return ctx @ params["out_proj_weight"].T + params["out_proj_bias"]


if __name__ == "__main__":
    embed_dim, num_heads, dropout, attention_window = 32, 4, 0.0, 4
    B, t_in, t_cond = 2, 8, 8

    key = jax.random.PRNGKey(0)
    kx, kc, kw1, kw2 = jax.random.split(key, 4)
    x = jax.random.normal(kx, (B, t_in, embed_dim), jnp.float32)
    condition = jax.random.normal(kc, (B, t_cond, embed_dim), jnp.float32)
    end_inds = jnp.array([6, 8], dtype=jnp.int32)

    # Deterministic parameter init (shapes from nn.MultiheadAttention + out_proj Linear).
    a_in = math.sqrt(6.0 / (embed_dim + 3 * embed_dim))                # xavier_uniform
    a_out = 1.0 / math.sqrt(embed_dim)
    params = {
        "in_proj_weight": jax.random.uniform(kw1, (3 * embed_dim, embed_dim),
                                             jnp.float32, -a_in, a_in),
        "in_proj_bias": jnp.zeros((3 * embed_dim,), jnp.float32),
        "out_proj_weight": jax.random.uniform(kw2, (embed_dim, embed_dim),
                                              jnp.float32, -a_out, a_out),
        "out_proj_bias": jnp.zeros((embed_dim,), jnp.float32),
    }

    prepared = prepare_params(params, num_heads)                       # hoisted weight prep
    out, _ = conditioned_sparse_attention(x, condition, end_inds, prepared,
                                          num_heads=num_heads,
                                          attention_window=attention_window)
    out = jax.block_until_ready(out)

    ref = _ref_forward(x, condition, end_inds, params,
                       num_heads=num_heads, attention_window=attention_window)
    # bf16 MXU operands (f32 accumulation) -> compare with bf16-level tolerance.
    np.testing.assert_allclose(np.asarray(out), np.asarray(ref), rtol=3e-2, atol=3e-2)
    print("KERNEL_OK")
</pallas_src>

<mosaic_0001>
module attributes {stable_mosaic.version = 11 : i64} {
  func.func @_mha_kernel(%arg0: i32, %arg1: memref<16x32xbf16, #tpu.memory_space<vmem>>, %arg2: memref<1x1x1xi32, #tpu.memory_space<vmem>>, %arg3: memref<32x96xbf16, #tpu.memory_space<vmem>>, %arg4: memref<1x96xf32, #tpu.memory_space<vmem>>, %arg5: memref<32x32xbf16, #tpu.memory_space<vmem>>, %arg6: memref<1x32xf32, #tpu.memory_space<vmem>>, %arg7: memref<16x32xf32, #tpu.memory_space<vmem>>, %arg8: memref<1x16x96xbf16, #tpu.memory_space<vmem>>, %arg9: memref<1x16x32xbf16, #tpu.memory_space<vmem>>) attributes {dimension_semantics = [#tpu.dimension_semantics<parallel>], iteration_bounds = array<i64: 2>, scalar_prefetch = 0 : i64, scratch_operands = 2 : i64, tpu.core_type = #tpu.core_type<tc>, window_params = [{transform_indices = @transform_0, window_bounds = array<i64: 16, 32>}, {transform_indices = @transform_1, window_bounds = array<i64: 1, 1, 1>}, {pipeline_mode = #tpu.pipeline_mode<synchronous>, transform_indices = @transform_2, window_bounds = array<i64: 32, 96>}, {pipeline_mode = #tpu.pipeline_mode<synchronous>, transform_indices = @transform_3, window_bounds = array<i64: 1, 96>}, {pipeline_mode = #tpu.pipeline_mode<synchronous>, transform_indices = @transform_4, window_bounds = array<i64: 32, 32>}, {pipeline_mode = #tpu.pipeline_mode<synchronous>, transform_indices = @transform_5, window_bounds = array<i64: 1, 32>}, {transform_indices = @transform_6, window_bounds = array<i64: 16, 32>}]} {
    %c0 = arith.constant 0 : index
    %c0_0 = arith.constant 0 : index
    %0 = vector.load %arg1[%c0, %c0_0] : memref<16x32xbf16, #tpu.memory_space<vmem>>, vector<16x32xbf16>
    %c0_1 = arith.constant 0 : index
    %c0_2 = arith.constant 0 : index
    %1 = vector.load %arg3[%c0_1, %c0_2] : memref<32x96xbf16, #tpu.memory_space<vmem>>, vector<32x96xbf16>
    %cst = arith.constant dense<0.000000e+00> : vector<16x96xf32>
    %2 = tpu.matmul %0, %1, %cst {dimension_numbers = #tpu.dot_dimension_numbers<[1], [0], [0], [1], [0, 0, 1, 1], [], []>} : vector<16x32xbf16>, vector<32x96xbf16>, vector<16x96xf32> -> vector<16x96xf32>
    %c0_3 = arith.constant 0 : index
    %c0_4 = arith.constant 0 : index
    %3 = vector.load %arg4[%c0_3, %c0_4] : memref<1x96xf32, #tpu.memory_space<vmem>>, vector<1x96xf32>
    %4 = vector.broadcast %3 : vector<1x96xf32> to vector<16x96xf32>
    %5 = arith.addf %2, %4 : vector<16x96xf32>
    %6 = vector.shape_cast %5 : vector<16x96xf32> to vector<1x16x96xf32>
    %7 = arith.truncf %6 : vector<1x16x96xf32> to vector<1x16x96xbf16>
    %c0_5 = arith.constant 0 : index
    %c0_6 = arith.constant 0 : index
    %c0_7 = arith.constant 0 : index
    %8 = vector.load %arg8[%c0_5, %c0_6, %c0_7] : memref<1x16x96xbf16, #tpu.memory_space<vmem>>, vector<1x16x96xbf16>
    tpu.vector_store %arg8[%c0_5, %c0_6, %c0_7], %7 {strides = array<i32>} : memref<1x16x96xbf16, #tpu.memory_space<vmem>>, vector<1x16x96xbf16>,
    %9 = tpu.iota {dimensions = array<i32: 2>} : vector<1x1x16xi32>
    %c8_i32 = arith.constant 8 : i32
    %10 = vector.broadcast %c8_i32 : i32 to vector<1x1x16xi32>
    %11 = arith.cmpi sge, %9, %10 : vector<1x1x16xi32>
    %c8_i32_8 = arith.constant 8 : i32
    %12 = vector.broadcast %c8_i32_8 : i32 to vector<1x1x16xi32>
    %13 = arith.subi %9, %12 : vector<1x1x16xi32>
    %14 = arith.select %11, %13, %9 : vector<1x1x16xi1>, vector<1x1x16xi32>
    %c0_9 = arith.constant 0 : index
    %c0_10 = arith.constant 0 : index
    %c0_11 = arith.constant 0 : index
    %15 = vector.load %arg2[%c0_9, %c0_10, %c0_11] : memref<1x1x1xi32, #tpu.memory_space<vmem>>, vector<1x1x1xi32>
    %c4_i32 = arith.constant 4 : i32
    %16 = vector.broadcast %c4_i32 : i32 to vector<1x1x1xi32>
    %17 = arith.subi %15, %16 : vector<1x1x1xi32>
    %18 = vector.broadcast %17 : vector<1x1x1xi32> to vector<1x1x16xi32>
    %19 = arith.cmpi sge, %14, %18 : vector<1x1x16xi32>
    %20 = vector.broadcast %15 : vector<1x1x1xi32> to vector<1x1x16xi32>
    %21 = arith.cmpi slt, %14, %20 : vector<1x1x16xi32>
    %22 = arith.andi %19, %21 : vector<1x1x16xi1>
    %23 = arith.extui %22 : vector<1x1x16xi1> to vector<1x1x16xi32>
    %24 = arith.sitofp %23 : vector<1x1x16xi32> to vector<1x1x16xf32>
    %c0_12 = arith.constant 0 : index
    %c0_13 = arith.constant 0 : index
    %c0_14 = arith.constant 0 : index
    %25 = vector.load %arg8[%c0_12, %c0_13, %c0_14] : memref<1x16x96xbf16, #tpu.memory_space<vmem>>, vector<1x16x8xbf16>
    %c0_15 = arith.constant 0 : index
    %c0_16 = arith.constant 0 : index
    %c32 = arith.constant 32 : index
    %26 = vector.load %arg8[%c0_15, %c0_16, %c32] : memref<1x16x96xbf16, #tpu.memory_space<vmem>>, vector<1x16x8xbf16>
    %c0_17 = arith.constant 0 : index
    %c0_18 = arith.constant 0 : index
    %c64 = arith.constant 64 : index
    %27 = vector.load %arg8[%c0_17, %c0_18, %c64] : memref<1x16x96xbf16, #tpu.memory_space<vmem>>, vector<1x16x8xbf16>
    "tpu.trace_start"() <{level = 10 : i32, message = "bqd,bkd->bqk"}> : () -> ()
    %cst_19 = arith.constant dense<0.000000e+00> : vector<1x16x16xf32>
    %28 = tpu.matmul %25, %26, %cst_19 {dimension_numbers = #tpu.dot_dimension_numbers<[2], [2], [1], [1], [0, 0, 0, 1, 1, 1], [0], [0]>} : vector<1x16x8xbf16>, vector<1x16x8xbf16>, vector<1x16x16xf32> -> vector<1x16x16xf32>
    "tpu.trace_stop"() : () -> ()
    %29 = vector.broadcast %24 : vector<1x1x16xf32> to vector<1x16x16xf32>
    %30 = arith.addf %28, %29 : vector<1x16x16xf32>
    %cst_20 = arith.constant dense<0xFF800000> : vector<1x16xf32>
    %31 = vector.multi_reduction <maximumf>, %30, %cst_20 [2] : vector<1x16x16xf32> to vector<1x16xf32>
    %32 = vector.shape_cast %31 : vector<1x16xf32> to vector<1x16x1xf32>
    %33 = vector.broadcast %32 : vector<1x16x1xf32> to vector<1x16x16xf32>
    %34 = arith.subf %30, %33 : vector<1x16x16xf32>
    %35 = math.exp %34 : vector<1x16x16xf32>
    %cst_21 = arith.constant dense<0.000000e+00> : vector<1x16xf32>
    %36 = vector.multi_reduction <add>, %35, %cst_21 [2] : vector<1x16x16xf32> to vector<1x16xf32>
    %37 = vector.shape_cast %36 : vector<1x16xf32> to vector<1x16x1xf32>
    %38 = arith.truncf %35 : vector<1x16x16xf32> to vector<1x16x16xbf16>
    "tpu.trace_start"() <{level = 10 : i32, message = "bqk,bkd->bqd"}> : () -> ()
    %cst_22 = arith.constant dense<0.000000e+00> : vector<1x16x8xf32>
    %39 = tpu.matmul %38, %27, %cst_22 {dimension_numbers = #tpu.dot_dimension_numbers<[2], [1], [1], [2], [0, 0, 0, 1, 1, 2], [0], [0]>} : vector<1x16x16xbf16>, vector<1x16x8xbf16>, vector<1x16x8xf32> -> vector<1x16x8xf32>
    "tpu.trace_stop"() : () -> ()
    %40 = tpu.reciprocal %37 {approx = true} : vector<1x16x1xf32> -> vector<1x16x1xf32>
    %41 = vector.broadcast %40 : vector<1x16x1xf32> to vector<1x16x8xf32>
    %42 = arith.mulf %39, %41 : vector<1x16x8xf32>
    %43 = arith.truncf %42 : vector<1x16x8xf32> to vector<1x16x8xbf16>
    %c0_23 = arith.constant 0 : index
    %c0_24 = arith.constant 0 : index
    %c0_25 = arith.constant 0 : index
    %44 = vector.load %arg9[%c0_23, %c0_24, %c0_25] : memref<1x16x32xbf16, #tpu.memory_space<vmem>>, vector<1x16x8xbf16>
    tpu.vector_store %arg9[%c0_23, %c0_24, %c0_25], %43 {strides = array<i32>} : memref<1x16x32xbf16, #tpu.memory_space<vmem>>, vector<1x16x8xbf16>,
    %c0_26 = arith.constant 0 : index
    %c0_27 = arith.constant 0 : index
    %c8 = arith.constant 8 : index
    %45 = vector.load %arg8[%c0_26, %c0_27, %c8] : memref<1x16x96xbf16, #tpu.memory_space<vmem>>, vector<1x16x8xbf16>
    %c0_28 = arith.constant 0 : index
    %c0_29 = arith.constant 0 : index
    %c40 = arith.constant 40 : index
    %46 = vector.load %arg8[%c0_28, %c0_29, %c40] : memref<1x16x96xbf16, #tpu.memory_space<vmem>>, vector<1x16x8xbf16>
    %c0_30 = arith.constant 0 : index
    %c0_31 = arith.constant 0 : index
    %c72 = arith.constant 72 : index
    %47 = vector.load %arg8[%c0_30, %c0_31, %c72] : memref<1x16x96xbf16, #tpu.memory_space<vmem>>, vector<1x16x8xbf16>
    "tpu.trace_start"() <{level = 10 : i32, message = "bqd,bkd->bqk"}> : () -> ()
    %cst_32 = arith.constant dense<0.000000e+00> : vector<1x16x16xf32>
    %48 = tpu.matmul %45, %46, %cst_32 {dimension_numbers = #tpu.dot_dimension_numbers<[2], [2], [1], [1], [0, 0, 0, 1, 1, 1], [0], [0]>} : vector<1x16x8xbf16>, vector<1x16x8xbf16>, vector<1x16x16xf32> -> vector<1x16x16xf32>
    "tpu.trace_stop"() : () -> ()
    %49 = vector.broadcast %24 : vector<1x1x16xf32> to vector<1x16x16xf32>
    %50 = arith.addf %48, %49 : vector<1x16x16xf32>
    %cst_33 = arith.constant dense<0xFF800000> : vector<1x16xf32>
    %51 = vector.multi_reduction <maximumf>, %50, %cst_33 [2] : vector<1x16x16xf32> to vector<1x16xf32>
    %52 = vector.shape_cast %51 : vector<1x16xf32> to vector<1x16x1xf32>
    %53 = vector.broadcast %52 : vector<1x16x1xf32> to vector<1x16x16xf32>
    %54 = arith.subf %50, %53 : vector<1x16x16xf32>
    %55 = math.exp %54 : vector<1x16x16xf32>
    %cst_34 = arith.constant dense<0.000000e+00> : vector<1x16xf32>
    %56 = vector.multi_reduction <add>, %55, %cst_34 [2] : vector<1x16x16xf32> to vector<1x16xf32>
    %57 = vector.shape_cast %56 : vector<1x16xf32> to vector<1x16x1xf32>
    %58 = arith.truncf %55 : vector<1x16x16xf32> to vector<1x16x16xbf16>
    "tpu.trace_start"() <{level = 10 : i32, message = "bqk,bkd->bqd"}> : () -> ()
    %cst_35 = arith.constant dense<0.000000e+00> : vector<1x16x8xf32>
    %59 = tpu.matmul %58, %47, %cst_35 {dimension_numbers = #tpu.dot_dimension_numbers<[2], [1], [1], [2], [0, 0, 0, 1, 1, 2], [0], [0]>} : vector<1x16x16xbf16>, vector<1x16x8xbf16>, vector<1x16x8xf32> -> vector<1x16x8xf32>
    "tpu.trace_stop"() : () -> ()
    %60 = tpu.reciprocal %57 {approx = true} : vector<1x16x1xf32> -> vector<1x16x1xf32>
    %61 = vector.broadcast %60 : vector<1x16x1xf32> to vector<1x16x8xf32>
    %62 = arith.mulf %59, %61 : vector<1x16x8xf32>
    %63 = arith.truncf %62 : vector<1x16x8xf32> to vector<1x16x8xbf16>
    %c0_36 = arith.constant 0 : index
    %c0_37 = arith.constant 0 : index
    %c8_38 = arith.constant 8 : index
    %64 = vector.load %arg9[%c0_36, %c0_37, %c8_38] : memref<1x16x32xbf16, #tpu.memory_space<vmem>>, vector<1x16x8xbf16>
    tpu.vector_store %arg9[%c0_36, %c0_37, %c8_38], %63 {strides = array<i32>} : memref<1x16x32xbf16, #tpu.memory_space<vmem>>, vector<1x16x8xbf16>,
    %c0_39 = arith.constant 0 : index
    %c0_40 = arith.constant 0 : index
    %c16 = arith.constant 16 : index
    %65 = vector.load %arg8[%c0_39, %c0_40, %c16] : memref<1x16x96xbf16, #tpu.memory_space<vmem>>, vector<1x16x8xbf16>
    %c0_41 = arith.constant 0 : index
    %c0_42 = arith.constant 0 : index
    %c48 = arith.constant 48 : index
    %66 = vector.load %arg8[%c0_41, %c0_42, %c48] : memref<1x16x96xbf16, #tpu.memory_space<vmem>>, vector<1x16x8xbf16>
    %c0_43 = arith.constant 0 : index
    %c0_44 = arith.constant 0 : index
    %c80 = arith.constant 80 : index
    %67 = vector.load %arg8[%c0_43, %c0_44, %c80] : memref<1x16x96xbf16, #tpu.memory_space<vmem>>, vector<1x16x8xbf16>
    "tpu.trace_start"() <{level = 10 : i32, message = "bqd,bkd->bqk"}> : () -> ()
    %cst_45 = arith.constant dense<0.000000e+00> : vector<1x16x16xf32>
    %68 = tpu.matmul %65, %66, %cst_45 {dimension_numbers = #tpu.dot_dimension_numbers<[2], [2], [1], [1], [0, 0, 0, 1, 1, 1], [0], [0]>} : vector<1x16x8xbf16>, vector<1x16x8xbf16>, vector<1x16x16xf32> -> vector<1x16x16xf32>
    "tpu.trace_stop"() : () -> ()
    %69 = vector.broadcast %24 : vector<1x1x16xf32> to vector<1x16x16xf32>
    %70 = arith.addf %68, %69 : vector<1x16x16xf32>
    %cst_46 = arith.constant dense<0xFF800000> : vector<1x16xf32>
    %71 = vector.multi_reduction <maximumf>, %70, %cst_46 [2] : vector<1x16x16xf32> to vector<1x16xf32>
    %72 = vector.shape_cast %71 : vector<1x16xf32> to vector<1x16x1xf32>
    %73 = vector.broadcast %72 : vector<1x16x1xf32> to vector<1x16x16xf32>
    %74 = arith.subf %70, %73 : vector<1x16x16xf32>
    %75 = math.exp %74 : vector<1x16x16xf32>
    %cst_47 = arith.constant dense<0.000000e+00> : vector<1x16xf32>
    %76 = vector.multi_reduction <add>, %75, %cst_47 [2] : vector<1x16x16xf32> to vector<1x16xf32>
    %77 = vector.shape_cast %76 : vector<1x16xf32> to vector<1x16x1xf32>
    %78 = arith.truncf %75 : vector<1x16x16xf32> to vector<1x16x16xbf16>
    "tpu.trace_start"() <{level = 10 : i32, message = "bqk,bkd->bqd"}> : () -> ()
    %cst_48 = arith.constant dense<0.000000e+00> : vector<1x16x8xf32>
    %79 = tpu.matmul %78, %67, %cst_48 {dimension_numbers = #tpu.dot_dimension_numbers<[2], [1], [1], [2], [0, 0, 0, 1, 1, 2], [0], [0]>} : vector<1x16x16xbf16>, vector<1x16x8xbf16>, vector<1x16x8xf32> -> vector<1x16x8xf32>
    "tpu.trace_stop"() : () -> ()
    %80 = tpu.reciprocal %77 {approx = true} : vector<1x16x1xf32> -> vector<1x16x1xf32>
    %81 = vector.broadcast %80 : vector<1x16x1xf32> to vector<1x16x8xf32>
    %82 = arith.mulf %79, %81 : vector<1x16x8xf32>
    %83 = arith.truncf %82 : vector<1x16x8xf32> to vector<1x16x8xbf16>
    %c0_49 = arith.constant 0 : index
    %c0_50 = arith.constant 0 : index
    %c16_51 = arith.constant 16 : index
    %84 = vector.load %arg9[%c0_49, %c0_50, %c16_51] : memref<1x16x32xbf16, #tpu.memory_space<vmem>>, vector<1x16x8xbf16>
    tpu.vector_store %arg9[%c0_49, %c0_50, %c16_51], %83 {strides = array<i32>} : memref<1x16x32xbf16, #tpu.memory_space<vmem>>, vector<1x16x8xbf16>,
    %c0_52 = arith.constant 0 : index
    %c0_53 = arith.constant 0 : index
    %c24 = arith.constant 24 : index
    %85 = vector.load %arg8[%c0_52, %c0_53, %c24] : memref<1x16x96xbf16, #tpu.memory_space<vmem>>, vector<1x16x8xbf16>
    %c0_54 = arith.constant 0 : index
    %c0_55 = arith.constant 0 : index
    %c56 = arith.constant 56 : index
    %86 = vector.load %arg8[%c0_54, %c0_55, %c56] : memref<1x16x96xbf16, #tpu.memory_space<vmem>>, vector<1x16x8xbf16>
    %c0_56 = arith.constant 0 : index
    %c0_57 = arith.constant 0 : index
    %c88 = arith.constant 88 : index
    %87 = vector.load %arg8[%c0_56, %c0_57, %c88] : memref<1x16x96xbf16, #tpu.memory_space<vmem>>, vector<1x16x8xbf16>
    "tpu.trace_start"() <{level = 10 : i32, message = "bqd,bkd->bqk"}> : () -> ()
    %cst_58 = arith.constant dense<0.000000e+00> : vector<1x16x16xf32>
    %88 = tpu.matmul %85, %86, %cst_58 {dimension_numbers = #tpu.dot_dimension_numbers<[2], [2], [1], [1], [0, 0, 0, 1, 1, 1], [0], [0]>} : vector<1x16x8xbf16>, vector<1x16x8xbf16>, vector<1x16x16xf32> -> vector<1x16x16xf32>
    "tpu.trace_stop"() : () -> ()
    %89 = vector.broadcast %24 : vector<1x1x16xf32> to vector<1x16x16xf32>
    %90 = arith.addf %88, %89 : vector<1x16x16xf32>
    %cst_59 = arith.constant dense<0xFF800000> : vector<1x16xf32>
    %91 = vector.multi_reduction <maximumf>, %90, %cst_59 [2] : vector<1x16x16xf32> to vector<1x16xf32>
    %92 = vector.shape_cast %91 : vector<1x16xf32> to vector<1x16x1xf32>
    %93 = vector.broadcast %92 : vector<1x16x1xf32> to vector<1x16x16xf32>
    %94 = arith.subf %90, %93 : vector<1x16x16xf32>
    %95 = math.exp %94 : vector<1x16x16xf32>
    %cst_60 = arith.constant dense<0.000000e+00> : vector<1x16xf32>
    %96 = vector.multi_reduction <add>, %95, %cst_60 [2] : vector<1x16x16xf32> to vector<1x16xf32>
    %97 = vector.shape_cast %96 : vector<1x16xf32> to vector<1x16x1xf32>
    %98 = arith.truncf %95 : vector<1x16x16xf32> to vector<1x16x16xbf16>
    "tpu.trace_start"() <{level = 10 : i32, message = "bqk,bkd->bqd"}> : () -> ()
    %cst_61 = arith.constant dense<0.000000e+00> : vector<1x16x8xf32>
    %99 = tpu.matmul %98, %87, %cst_61 {dimension_numbers = #tpu.dot_dimension_numbers<[2], [1], [1], [2], [0, 0, 0, 1, 1, 2], [0], [0]>} : vector<1x16x16xbf16>, vector<1x16x8xbf16>, vector<1x16x8xf32> -> vector<1x16x8xf32>
    "tpu.trace_stop"() : () -> ()
    %100 = tpu.reciprocal %97 {approx = true} : vector<1x16x1xf32> -> vector<1x16x1xf32>
    %101 = vector.broadcast %100 : vector<1x16x1xf32> to vector<1x16x8xf32>
    %102 = arith.mulf %99, %101 : vector<1x16x8xf32>
    %103 = arith.truncf %102 : vector<1x16x8xf32> to vector<1x16x8xbf16>
    %c0_62 = arith.constant 0 : index
    %c0_63 = arith.constant 0 : index
    %c24_64 = arith.constant 24 : index
    %104 = vector.load %arg9[%c0_62, %c0_63, %c24_64] : memref<1x16x32xbf16, #tpu.memory_space<vmem>>, vector<1x16x8xbf16>
    tpu.vector_store %arg9[%c0_62, %c0_63, %c24_64], %103 {strides = array<i32>} : memref<1x16x32xbf16, #tpu.memory_space<vmem>>, vector<1x16x8xbf16>,
    %c0_65 = arith.constant 0 : index
    %c0_66 = arith.constant 0 : index
    %c0_67 = arith.constant 0 : index
    %105 = vector.load %arg9[%c0_65, %c0_66, %c0_67] : memref<1x16x32xbf16, #tpu.memory_space<vmem>>, vector<1x16x32xbf16>
    %106 = vector.shape_cast %105 : vector<1x16x32xbf16> to vector<16x32xbf16>
    %c0_68 = arith.constant 0 : index
    %c0_69 = arith.constant 0 : index
    %107 = vector.load %arg5[%c0_68, %c0_69] : memref<32x32xbf16, #tpu.memory_space<vmem>>, vector<32x32xbf16>
    %cst_70 = arith.constant dense<0.000000e+00> : vector<16x32xf32>
    %108 = tpu.matmul %106, %107, %cst_70 {dimension_numbers = #tpu.dot_dimension_numbers<[1], [0], [0], [1], [0, 0, 1, 1], [], []>} : vector<16x32xbf16>, vector<32x32xbf16>, vector<16x32xf32> -> vector<16x32xf32>
    %c0_71 = arith.constant 0 : index
    %c0_72 = arith.constant 0 : index
    %109 = vector.load %arg6[%c0_71, %c0_72] : memref<1x32xf32, #tpu.memory_space<vmem>>, vector<1x32xf32>
    %110 = vector.broadcast %109 : vector<1x32xf32> to vector<16x32xf32>
    %111 = arith.addf %108, %110 : vector<16x32xf32>
    %c0_73 = arith.constant 0 : index
    %c0_74 = arith.constant 0 : index
    %112 = vector.load %arg7[%c0_73, %c0_74] : memref<16x32xf32, #tpu.memory_space<vmem>>, vector<16x32xf32>
    tpu.vector_store %arg7[%c0_73, %c0_74], %111 {strides = array<i32>} : memref<16x32xf32, #tpu.memory_space<vmem>>, vector<16x32xf32>,
    return
  }
  func.func @transform_0(%arg0: i32) -> (i32, i32) {
    %c0_i32 = arith.constant 0 : i32
    %c0_i32_0 = arith.constant 0 : i32
    return %arg0, %c0_i32 : i32, i32
  }
  func.func @transform_1(%arg0: i32) -> (i32, i32, i32) {
    %c0_i32 = arith.constant 0 : i32
    %c0_i32_0 = arith.constant 0 : i32
    %c0_i32_1 = arith.constant 0 : i32
    return %arg0, %c0_i32, %c0_i32_0 : i32, i32, i32
  }
  func.func @transform_2(%arg0: i32) -> (i32, i32) {
    %c0_i32 = arith.constant 0 : i32
    %c0_i32_0 = arith.constant 0 : i32
    %c0_i32_1 = arith.constant 0 : i32
    return %c0_i32, %c0_i32_0 : i32, i32
  }
  func.func @transform_3(%arg0: i32) -> (i32, i32) {
    %c0_i32 = arith.constant 0 : i32
    %c0_i32_0 = arith.constant 0 : i32
    %c0_i32_1 = arith.constant 0 : i32
    return %c0_i32, %c0_i32_0 : i32, i32
  }
  func.func @transform_4(%arg0: i32) -> (i32, i32) {
    %c0_i32 = arith.constant 0 : i32
    %c0_i32_0 = arith.constant 0 : i32
    %c0_i32_1 = arith.constant 0 : i32
    return %c0_i32, %c0_i32_0 : i32, i32
  }
  func.func @transform_5(%arg0: i32) -> (i32, i32) {
    %c0_i32 = arith.constant 0 : i32
    %c0_i32_0 = arith.constant 0 : i32
    %c0_i32_1 = arith.constant 0 : i32
    return %c0_i32, %c0_i32_0 : i32, i32
  }
  func.func @transform_6(%arg0: i32) -> (i32, i32) {
    %c0_i32 = arith.constant 0 : i32
    %c0_i32_0 = arith.constant 0 : i32
    return %arg0, %c0_i32 : i32, i32
  }
}

</mosaic_0001>

<bundles_post_ra>
// kernel: tpu_custom_call.1
= control target key start
LH: loop header
LB: loop body
LE: loop exit
PB: predicated region body
PF: predicated region fallthrough
CT: control target
= control target key end

     0   :  { %11 = vsyncpa [#allocation5], 0  ;;  %s1970_s0 = inlined_call_operand.hbm [shape: bf16[32,32], index: 0, kind: input, shape index: {}]   ;;  %s1971_s1 = inlined_call_operand.vmem [shape: s32[2,1,1], index: 1, kind: input, shape index: {}]   ;;  %s1972_s2 = inlined_call_operand.hbm [shape: bf16[32,96], index: 2, kind: input, shape index: {}]   ;;  %s1973_s3 = inlined_call_operand.vmem [shape: f32[1,96], index: 3, kind: input, shape index: {}]   ;;  %s1974_s4 = inlined_call_operand.hbm [shape: bf16[32,32], index: 4, kind: input, shape index: {}]   ;;  %s1975_s5 = inlined_call_operand.vmem [shape: f32[1,32], index: 5, kind: input, shape index: {}]   ;;  %s1976_s6 = inlined_call_operand.hbm [shape: f32[32,32], index: 6, kind: output, shape index: {}]  }
   0x1   :  { %13 = vsyncpa [#allocation5 + $0x1], 0 }
   0x2   :  { %14 = vsyncpa [#allocation8], 0 }
   0x3   :  { %15 = vsyncpa [#allocation6], 0 }
   0x4   :  { %17 = vsyncpa [#allocation6 + $0x1], 0  ;;  %s1678_s21 = smov 0   ;;  %s1680_s22 = smov 0  }
   0x5   :  { %s1682_s23 = smov 0   ;;  %s1684_s24 = smov 0  }
   0x6 LB: > { %s1699_s25 = sadd.s32 4294967295, %s1617_s24   ;;  %s1187_s26 = sadd.s32 4294967294, %s1617_s24   ;;  %s1617_s24 = sphi %s1684_s24, %s2001_s24   ;;  %s1613_s23 = sphi %s1682_s23, %s2000_s23   ;;  %s1609_s22 = sphi %s1680_s22, %s1999_s22   ;;  %s1605_s21 = sphi %s1678_s21, %s1998_s21  }
   0x7   : > { %p43_p0 = scmp.ne.s32.totalorder %s1609_s22, %s1605_s21  ;;  %p1977_p1 = scmp.eq.s32.totalorder %s1699_s25, 0 }
   0x8   : > { %p177_p2 = scmp.eq.s32.totalorder %s1699_s25, 1  ;;  %p183_p3 = scmp.eq.s32.totalorder %s1187_s26, 1 }
   0x9   : > { %p1708_p4 = por %p1977_p1, %p43_p0  ;;  %p1188_p5 = scmp.ge.s32.totalorder %s1617_s24, 1 }
   0xa   : > { %p1713_p6 = por %p183_p3, %p43_p0  ;;  %p190_p7 = scmp.lt.s32.totalorder %s1617_s24, 3 }
   0xb   : > { %s1983_s27 = scalar_select %p1708_p4, 1, 0 }
   0xc   : > { %s1984_s28 = scalar_select %p1713_p6, 1, 0 }
   0xd   : > { %p1718_p8 = pnand %p1188_p5, %p190_p7  ;;  %s1619_s30 = smov [#allocation7]  }
   0xe   : > { %s202_s7 = sshll.u32 %s1619_s30, 4  ;;  %s1620_s9 = smov [#allocation9]   ;;  %s203_s7 = int_to_ptr.vmem [resolvable:$true] %s202_s7 }
   0xf   : > { %s1985_s29 = scalar_select %p1718_p8, 1, 0 }
  0x10   : > { %p1350_p9 = pneg %p1718_p8  ;;  %s218_s10 = sshll.u32 %s1620_s9, 4  ;;  %s219_s10 = int_to_ptr.vmem [resolvable:$true] %s218_s10 }
  0x11   : > { %s1480_s11 = scalar_lea.vmem %s203_s7, 256  ;;  %p1488_p5 = scmp.lt.s32.totalorder %s203_s7, %s203_s7 }
  0x12   : > { %p1727_p11 = pnand %p1350_p9, %p1977_p1  ;;  %p1481_p13 = scmp.ne.s32.totalorder %s203_s7, %s1480_s11 }
  0x13   : > { %p1489_p7 = scmp.lt.s32.totalorder %s1480_s11, %s1480_s11 }
  0x14   : > { %p1471_p12 = pneg %p1727_p11 }
  0x15   : > { %p1490_p10 = por %p1489_p7, %p1488_p5 }
  0x16   : > { %p1483_p0 = pnand %p1481_p13, %p1471_p12 }
  0x18   : > { %p1484_p3 = pneg %p1483_p0 }
  0x1a   : > { %p1491_p9 = pnand %p1490_p10, %p1484_p3 }
  0x1c   : > { %1494 = shalt.err (!%p1491_p9)
}
  0x1d   : > { %s1978_s12 = smov 64   ;;  %s1979_s13 = smov 4  }
  0x1e   : > { %1353 = dma.hbm_to_vmem [thread:$0]  (!%p1727_p11), %s1972_s2, 256, %s203_s7, [#allocation8], %s1978_s12, %s1978_s12, %s1979_s13  }
  0x1f   : > { %s1506_s16 = scalar_lea.vmem %s219_s10, 256  ;;  %p1514_p10 = scmp.lt.s32.totalorder %s219_s10, %s219_s10 }
  0x20   : > { %p1507_p13 = scmp.ne.s32.totalorder %s219_s10, %s1506_s16  ;;  %p1515_p3 = scmp.lt.s32.totalorder %s1506_s16, %s1506_s16 }
  0x22   : > { %p1509_p0 = pnand %p1507_p13, %p1471_p12  ;;  %p1516_p7 = por %p1515_p3, %p1514_p10 }
  0x24   : > { %p1510_p5 = pneg %p1509_p0 }
  0x26   : > { %p1517_p9 = pnand %p1516_p7, %p1510_p5 }
  0x28   : > { %1520 = shalt.err (!%p1517_p9)
}
  0x29   : > { %1356 = dma.hbm_to_vmem [thread:$0]  (!%p1727_p11), %s1974_s4, 256, %s219_s10, [#allocation8], %s1978_s12, %s1978_s12, %s1979_s13  }
  0x2a   : > { %s1756_s19 = sadd.s32 1, %s1617_s24   ;;  %s30_s20 = sadd.s32 1, %s1613_s23 }
  0x2b   : > { %s27_s26 = ssub.s32 %s1617_s24, %s1756_s19  ;;  %p37_p12 = scmp.ne.s32.totalorder %s1613_s23, %s1609_s22 }
  0x2c   : > { %p28_p13 = scmp.eq.s32.totalorder %s27_s26, 0  ;;  %p38_p0 = scmp.eq.s32.totalorder %s1617_s24, 0 }
  0x2d   : > { %p1766_p5 = por %p177_p2, %p37_p12  ;;  %p1367_p10 = scmp.lt.s32.totalorder %s1617_s24, 2 }
  0x2e   : > { %s1772_s7 = scalar_select %p28_p13, %s1613_s23, %s30_s20  }
  0x2f   : > { %s1987_s30 = scalar_select %p1766_p5, 1, 0 }
  0x30   : > { %p39_p3 = por %p38_p0, %p37_p12  ;;  %s235_s8 = sand.u32 1, %s1613_s23  }
  0x31   : > { %s1192_s9 = sshll.u32 %s235_s8, 3  ;;  %s1240_s10 = sshll.u32 %s1617_s24, 7 }
  0x32   : > { %s1779_s15 = scalar_lea.hbm %s1970_s0, %s1240_s10  ;;  %s239_s16 = scalar_lea.vmem [#allocation4], %s1192_s9 }
  0x33   : > { %s246_s17 = sshll.u32 %s239_s16, 4  ;;  %p1783_p2 = pnand %p1367_p10, %p39_p3  ;;  %s1781_s17 = int_to_ptr.vmem [resolvable:$true] %s246_s17 }
  0x34   : > { %s1787_s20 = scalar_lea.sflag [#allocation5], %s235_s8  ;;  %s1521_s26 = scalar_lea.hbm %s1779_s15, 128 }
  0x35   : > { %p1522_p11 = scmp.ne.s32.totalorder %s1779_s15, %s1521_s26  ;;  %p1523_p7 = pneg %p1783_p2 }
  0x36   : > { %s1526_s9 = scalar_lea.hbm %s1970_s0, 256  ;;  %p1527_p13 = scmp.lt.s32.totalorder %s1779_s15, %s1970_s0 }
  0x37   : > { %p1524_p9 = pnand %p1523_p7, %p1522_p11  ;;  %p1528_p0 = scmp.lt.s32.totalorder %s1526_s9, %s1521_s26 }
  0x39   : > { %p1525_p12 = pneg %p1524_p9  ;;  %p1529_p10 = por %p1528_p0, %p1527_p13 }
  0x3b   : > { %p1530_p3 = pnand %p1529_p10, %p1525_p12 }
  0x3d   : > { %1533 = shalt.err (!%p1530_p3)
}
  0x3e   : > { %s1534_s8 = scalar_lea.vmem %s1781_s17, 128  ;;  %s1623_s12 = smov [#allocation4]  }
  0x3f   : > { %p1535_p1 = scmp.ne.s32.totalorder %s1781_s17, %s1534_s8  ;;  %s1539_s13 = sshll.u32 %s1623_s12, 4  ;;  %s1540_s13 = int_to_ptr.vmem [resolvable:$false] %s1539_s13 }
  0x40   : > { %s1541_s10 = scalar_lea.vmem %s1540_s13, 256  ;;  %p1542_p9 = scmp.lt.s32.totalorder %s1781_s17, %s1540_s13 }
  0x41   : > { %p1537_p6 = pnand %p1535_p1, %p1523_p7  ;;  %p1543_p5 = scmp.lt.s32.totalorder %s1541_s10, %s1534_s8 }
  0x43   : > { %p1538_p11 = pneg %p1537_p6  ;;  %p1544_p4 = por %p1543_p5, %p1542_p9 }
  0x45   : > { %p1545_p8 = pnand %p1544_p4, %p1538_p11 }
  0x47   : > { %1548 = shalt.err (!%p1545_p8)
}
  0x48   : > { %s1989_s26 = smov 4   ;;  %s1990_s11 = smov 64  }
  0x49   : > { %1360 = dma.hbm_to_vmem [thread:$0]  (!%p1783_p2), %s1779_s15, 128, %s1781_s17, %s1787_s20, %s1990_s11, %s1990_s11, %s1989_s26  }
  0x4a   : > { %p1991_p1 = scmp.ne.s32.totalorder %s1985_s29, 0 }
  0x4b   : > { %s1814_s12 = sand.u32 (!%p1991_p1), 1, %s1609_s22   ;;  %p1992_p4 = scmp.ne.s32.totalorder (!%p1991_p1), %s1983_s27, 0 }
  0x4c   : > { %264 = sbr.rel (%p1991_p1) target bundleno = 1350 (0x546), region = 44  ;;  %s1196_s13 = sshll.u32 (!%p1991_p1), %s1814_s12, 3 }
  0x4d   : > { %s267_s9 = scalar_lea.sflag (!%p1991_p1), [#allocation5], %s1814_s12  ;;  %s270_s14 = scalar_lea.vmem (!%p1991_p1), [#allocation4], %s1196_s13 }
  0x51   : > { %1592 = dma.done.wait (%p1992_p4), %s267_s9, 128  }
  0x52   : > { %1594 = vsyncadd (%p1992_p4), %s267_s9, 4294967168  ;;  %p1993_p6 = scmp.eq.s32.totalorder %s1699_s25, 0 }
  0x54   : > { %1596 = dma.done.wait (%p1993_p6), [#allocation8], 512   ;;  %p1994_p8 = pmov %p1993_p6 }
  0x55   : > { %v1624_v0 = vmov 0.0   ;;  %vm1625_vm0 = vmmov 0   ;;  %v1427_v1 = vld [vmem:[#allocation7 + $0x8] sm:$0xff]   ;;  %v1428_v2 = vld [vmem:[#allocation7] sm:$0xff]   ;;  %v1429_v3 = vld [vmem:[%s270_s14] sm:$0xff]   ;;  %vm346_vm1 = vcmask 261120   ;;  %v402_v33 = vlaneseq }
  0x56   : > { %1598 = vsyncadd (%p1994_p8), [#allocation8], 4294966784  ;;  %1274 = vmatprep.subr.bf16.mxu0 %v1624_v0  ;;  %1278 = vmatprep.mubr.msk.bf16.mxu0 %vm1625_vm0, %v1624_v0  ;;  %v1626_v4 = vmov 0   ;;  %v1200_v5 = vld [vmem:[%s1973_s3] ss:$0 sm:$0xff]  ;;  %vm399_vm2 = vcmask 781312  }
  0x57   : > { %1282 = vmatprep.subr.bf16.mxu1 %v1624_v0  ;;  %1284 = vmatprep.mubr.msk.bf16.mxu1 %vm1625_vm0, %v1624_v0  ;;  %p311_p5 = scmp.lt.s32.totalorder %s1699_s25, 1  ;;  %s1627_s17 = smov 120   ;;  %vm437_vm3 = vcmask 64512   ;;  %v413_v34 = vshrl.u32 %v402_v33, 7  ;;  %v403_v35 = vand.u32 127, %v402_v33  ;;  %vm485_vm8 = vcmask 130048  }
  0x58   : > { %1275 = vmatpush3.bf16.msra.mxu0 %v1427_v1  ;;  %1425 = vset.pattern.permute.xlu1 %v1626_v4  ;;  %s1628_s18 = smov 96   ;;  %s1629_s10 = smov 80   ;;  %vm564_vm9 = vcmask 60416   ;;  %vm707_vm10 = vcmask 126016   ;;  %vm850_vm11 = vcmask 191616   ;;  %vm993_vm12 = vcmask 257216  }
  0x59   : > { %1276 = vmatprep.subr.bf16.mxu0 %v1624_v0  ;;  %1426 = vset.pattern.permute.xlu0 %v1626_v4  ;;  %s312_s15 = scalar_select %p311_p5, %s1699_s25, 1  ;;  %v414_v36 = vsub.s32 0, %v413_v34  ;;  %v1207_v37 = vadd.s32 4294967288, %v403_v35  ;;  %vm404_vm4 = vcmp.ge.s32.totalorder %v403_v35, 8 }
  0x5a   : > { %s1630_s26 = smov 88   ;;  %s1631_s11 = smov 72  }
  0x5b   : > { %s313_s8 = scalar_lea.vmem %s1971_s1, %s312_s15  ;;  %s1632_s13 = smov 112   ;;  %v406_v41 = vsel %vm404_vm4, %v1207_v37, %v403_v35 }
  0x5c   : > { %1277 = vmatpush3.bf16.msra.mxu0 %v1428_v2  ;;  %v407_v17 = vld [vmem:[%s313_s8] sm:$0x1]  ;;  %s1633_s9 = smov 104   ;;  %s1634_s14 = smov 64  }
  0x5d   : > { %1288 = vmatprep.subr.bf16.mxu0 %v1624_v0  ;;  %v1208_v19 = vadd.s32 4294967292, %v407_v17  ;;  %s1635_s27 = smov 48   ;;  %s1636_s29 = smov 40  }
  0x5e   : > { %s1637_s15 = smov 56   ;;  %s1640_s20 = smov 24  }
  0x5f   : > { %1279 = vmatmul.mubr.msk.bf16.vlgmr.msra.gmra.mxu0 %vm346_vm1, %v1429_v3  ;;  %s1199_s16 = sshll.u32 %s1814_s12, 4  ;;  %p1995_p7 = scmp.ne.s32.totalorder %s1987_s30, 0 }
  0x60   : > { %1290 = vmatprep.mubr.msk.bf16.mxu0 %vm1625_vm0, %v1624_v0 }
 0x11f   : > { %v384_v6 = vpop.f32.mrf.mxu0 }
 0x120   : > { %v385_v7 = vadd.f32 %v1200_v5, %v384_v6 }
 0x121   : > { %v1280_v8 = vpop.f32.mrf.mxu0 }
 0x122   : > { %v1241_v9 = vpack.c.bf16 %v385_v7, %v385_v7 }
 0x123   : > { %v387_v10 = vpop.f32.mrf.mxu0 }
 0x124   : > { %400 = vst.msk [vmem:[#allocation2] sm:$0xf] %vm399_vm2, %v1241_v9  ;;  %v388_v11 = vadd.f32 %v1200_v5, %v387_v10 }
 0x125   : > { %v1281_v12 = vpop.f32.mrf.mxu0 }
 0x126   : > { %v1242_v13 = vpack.c.bf16 %v388_v11, %v388_v11 }
 0x128   : > { %401 = vst.msk [vmem:[#allocation2 + $0x4] sm:$0xf] %vm399_vm2, %v1242_v13 }
 0x12f   : > { %v1841_v14 = vld [vmem:[#allocation2] sm:$0xff]  }
 0x130   : > { %v1431_v15 = vld [vmem:[#allocation2] sm:$0xff]   ;;  %574 = vrot.lane.b32.xlu1 %v1841_v14, %s1627_s17  ;;  %s1638_s17 = smov 8  }
 0x131   : > { %435 = vrot.lane.b32.xlu0 %v1431_v15, %s1628_s18  ;;  %v1845_v16 = vld [vmem:[#allocation2] sm:$0xff]   ;;  %s1639_s18 = smov 16  }
 0x132   : > { %v1852_v18 = vld [vmem:[#allocation2] sm:$0xff]  }
 0x134   : > { %719 = vrot.lane.b32.xlu1 %v1845_v16, %s1629_s10 }
 0x135   : > { %576 = vrot.lane.b32.xlu0 %v1841_v14, %s1630_s26  ;;  %s309_s26 = scalar_lea.vmem [#allocation10], %s1199_s16 }
 0x138   : > { %862 = vrot.lane.b32.xlu1 %v1852_v18, %s1631_s11  ;;  %s1086_s11 = sshll.u32 %s309_s26, 4  ;;  %s1920_s11 = int_to_ptr.vmem [resolvable:$true] %s1086_s11 }
 0x139   : > { %717 = vrot.lane.b32.xlu0 %v1845_v16, %s1632_s13  ;;  %s1251_s13 = sshll.u32 %s1699_s25, 8  ;;  %s1641_s25 = smov [#allocation10]  }
 0x13c   : > { %410 = vperm.xlu1 %1425, %v1208_v19  }
 0x13d   : > { %860 = vrot.lane.b32.xlu0 %v1852_v18, %s1633_s9 }
 0x140   : > { %505 = vrot.lane.b32.xlu1 %v1431_v15, %s1634_s14 }
 0x141   : > { %418 = vperm.xlu0 %1426, %v407_v17  }
 0x1a2   : > { %v575_v22 = vpop.permute.xlu1 %574 }
 0x1a3   : > { %v436_v20 = vpop.permute.xlu0 %435 }
 0x1a4   : > { %v442_v21 = vsel %vm437_vm3, %v436_v20, 0 }
 0x1a5   : > { %1283 = vmatpush3.bf16.xpose.msra.mxu1 %v442_v21 }
 0x1a6   : > { %1294 = vmatprep.subr.bf16.mxu1 %v1624_v0  ;;  %v720_v25 = vpop.permute.xlu1 %719 }
 0x1a7   : > { %v577_v23 = vpop.permute.xlu0 %576  ;;  %v725_v27 = vsel %vm437_vm3, %v720_v25, 0 }
 0x1a8   : > { %v582_v24 = vsel %vm437_vm3, %v577_v23, 0 }
 0x1aa   : > { %v863_v26 = vpop.permute.xlu1 %862 }
 0x1ab   : > { %v718_v29 = vpop.permute.xlu0 %717  ;;  %v868_v31 = vsel %vm437_vm3, %v863_v26, 0 }
 0x1ac   : > { %1285 = vmatmul.mubr.msk.bf16.vlgmr.msra.gmra.mxu1 %vm437_vm3, %v1431_v15 }
 0x1ad   : > { %1295 = vmatpush3.bf16.xpose.msra.mxu1 %v582_v24  ;;  %1296 = vmatprep.mubr.msk.bf16.mxu1 %vm1625_vm0, %v1624_v0 }
 0x1ae   : > { %1306 = vmatprep.subr.bf16.mxu1 %v1624_v0 }
 0x1af   : > { %v861_v32 = vpop.permute.xlu0 %860 }
 0x1b4   : > { %1297 = vmatmul.mubr.msk.bf16.vlgmr.msra.gmra.mxu1 %vm437_vm3, %v575_v22 }
 0x1b5   : > { %1307 = vmatpush3.bf16.xpose.msra.mxu1 %v725_v27  ;;  %1308 = vmatprep.mubr.msk.bf16.mxu1 %vm1625_vm0, %v1624_v0 }
 0x1b6   : > { %1318 = vmatprep.subr.bf16.mxu1 %v1624_v0 }
 0x1b7   : > { %v411_v28 = vpop.permute.xlu1 %410 }
 0x1b8   : > { %v415_v39 = vrot.slane %v411_v28, %v414_v36 }
 0x1ba   : > { %vm416_vm5 = vcmp.ge.s32.totalorder %v406_v41, %v415_v39 }
 0x1bb   : > { %v506_v30 = vpop.permute.xlu1 %505 }
 0x1bc   : > { %1309 = vmatmul.mubr.msk.bf16.vlgmr.msra.gmra.mxu1 %vm437_vm3, %v718_v29  ;;  %1289 = vmatpush3.bf16.msra.mxu0 %v506_v30  ;;  %v419_v38 = vpop.permute.xlu0 %418 }
 0x1bd   : > { %1319 = vmatpush3.bf16.xpose.msra.mxu1 %v868_v31  ;;  %1320 = vmatprep.mubr.msk.bf16.mxu1 %vm1625_vm0, %v1624_v0  ;;  %v423_v40 = vrot.slane %v419_v38, %v414_v36 }
 0x1be   : > { %1300 = vmatprep.subr.bf16.mxu0 %v1624_v0  ;;  %1330 = vmatprep.subr.bf16.mxu1 %v1624_v0 }
 0x1bf   : > { %vm424_vm6 = vcmp.lt.s32.totalorder %v406_v41, %v423_v40 }
 0x1c0   : > { %vm425_vm7 = vmand %vm416_vm5, %vm424_vm6 }
 0x1c1   : > { %v1209_v42 = vsel %vm425_vm7, 1.0, %v1624_v0 }
 0x1c4   : > { %1321 = vmatmul.mubr.msk.bf16.vlgmr.msra.gmra.mxu1 %vm437_vm3, %v861_v32 }
 0x1c5   : > { %1334 = vmatprep.mubr.msk.bf16.mxu1 %vm1625_vm0, %v1624_v0 }
 0x26c   : > { %v478_v43 = vpop.f32.mrf.mxu1 }
 0x26d   : > { %v479_v44 = vadd.f32 %v1209_v42, %v478_v43 }
 0x26e   : > { %v1286_v45 = vpop.f32.mrf.mxu1 }
 0x26f   : > { %v486_v46 = vsel %vm485_vm8, %v479_v44, -inf }
 0x270   : > { %v481_v47 = vpop.f32.mrf.mxu1  ;;  %487 = vmax.xlane.f32.xlu1 %v486_v46 }
 0x271   : > { %v482_v48 = vadd.f32 %v1209_v42, %v481_v47 }
 0x272   : > { %v1287_v49 = vpop.f32.mrf.mxu1 }
 0x273   : > { %v489_v50 = vsel %vm485_vm8, %v482_v48, -inf }
 0x274   : > { %v618_v51 = vpop.f32.mrf.mxu1  ;;  %490 = vmax.xlane.f32.xlu0 %v489_v50 }
 0x275   : > { %v619_v52 = vadd.f32 %v1209_v42, %v618_v51 }
 0x276   : > { %v1298_v53 = vpop.f32.mrf.mxu1 }
 0x277   : > { %v625_v54 = vsel %vm485_vm8, %v619_v52, -inf }
 0x278   : > { %v621_v55 = vpop.f32.mrf.mxu1  ;;  %626 = vmax.xlane.f32.xlu1 %v625_v54 }
 0x279   : > { %v622_v56 = vadd.f32 %v1209_v42, %v621_v55 }
 0x27a   : > { %v1299_v57 = vpop.f32.mrf.mxu1 }
 0x27b   : > { %v628_v58 = vsel %vm485_vm8, %v622_v56, -inf }
 0x27c   : > { %v761_v59 = vpop.f32.mrf.mxu1  ;;  %629 = vmax.xlane.f32.xlu0 %v628_v58 }
 0x27d   : > { %v762_v60 = vadd.f32 %v1209_v42, %v761_v59 }
 0x27e   : > { %v1310_v61 = vpop.f32.mrf.mxu1 }
 0x27f   : > { %v768_v62 = vsel %vm485_vm8, %v762_v60, -inf }
 0x280   : > { %v764_v63 = vpop.f32.mrf.mxu1  ;;  %769 = vmax.xlane.f32.xlu1 %v768_v62 }
 0x281   : > { %v765_v1 = vadd.f32 %v1209_v42, %v764_v63 }
 0x282   : > { %v1311_v2 = vpop.f32.mrf.mxu1 }
 0x283   : > { %v771_v3 = vsel %vm485_vm8, %v765_v1, -inf }
 0x284   : > { %v904_v4 = vpop.f32.mrf.mxu1  ;;  %772 = vmax.xlane.f32.xlu0 %v771_v3 }
 0x285   : > { %v905_v5 = vadd.f32 %v1209_v42, %v904_v4 }
 0x286   : > { %v1322_v6 = vpop.f32.mrf.mxu1 }
 0x287   : > { %v911_v7 = vsel %vm485_vm8, %v905_v5, -inf }
 0x288   : > { %v907_v8 = vpop.f32.mrf.mxu1  ;;  %912 = vmax.xlane.f32.xlu1 %v911_v7 }
 0x289   : > { %v908_v9 = vadd.f32 %v1209_v42, %v907_v8 }
 0x28a   : > { %v1323_v10 = vpop.f32.mrf.mxu1 }
 0x28b   : > { %v914_v11 = vsel %vm485_vm8, %v908_v9, -inf }
 0x28c   : > { %915 = vmax.xlane.f32.xlu0 %v914_v11 }
 0x299   : > { %787 = vrot.lane.b32.xlu1 %v1845_v16, %s1635_s27  ;;  %s1925_s27 = scalar_lea.hbm %s1976_s6, %s1251_s13 }
 0x29d   : > { %930 = vrot.lane.b32.xlu1 %v1852_v18, %s1636_s29  ;;  %s1073_s29 = scalar_lea.sflag [#allocation6], %s1814_s12 }
 0x2a2   : > { %644 = vrot.lane.b32.xlu0 %v1841_v14, %s1637_s15  ;;  %s1549_s15 = scalar_lea.vmem %s1920_s11, 256 }
 0x2a3   : > { %p1550_p2 = scmp.ne.s32.totalorder %s1920_s11, %s1549_s15 }
 0x2a5   : > { %p1551_p12 = pnand %p1550_p2, %p1995_p7 }
 0x2a7   : > { %p1552_p13 = pneg %p1551_p12 }
 0x2f9   : > { %v488_v12 = vpop.xlane.xlu1 %487 }
 0x2fa   : > { %v492_v13 = vsub.f32 %v479_v44, %v488_v12 }
 0x2fc   : > { %v494_v15 = vmul.f32 1.442695, %v492_v13 }
 0x2fd   : > { %v491_v17 = vpop.xlane.xlu0 %490 }
 0x2fe   : > { %v493_v19 = vsub.f32 %v482_v48, %v491_v17  ;;  %1437 = vpow2.f32 %v494_v15 }
 0x300   : > { %v496_v20 = vmul.f32 1.442695, %v493_v19 }
 0x301   : > { %v627_v21 = vpop.xlane.xlu1 %626 }
 0x302   : > { %1439 = vpow2.f32 %v496_v20  ;;  %v631_v22 = vsub.f32 %v619_v52, %v627_v21 }
 0x304   : > { %v633_v23 = vmul.f32 1.442695, %v631_v22 }
 0x305   : > { %v630_v24 = vpop.xlane.xlu0 %629 }
 0x306   : > { %1441 = vpow2.f32 %v633_v23  ;;  %v632_v16 = vsub.f32 %v622_v56, %v630_v24 }
 0x308   : > { %v635_v25 = vmul.f32 1.442695, %v632_v16 }
 0x309   : > { %v770_v26 = vpop.xlane.xlu1 %769 }
 0x30a   : > { %1443 = vpow2.f32 %v635_v25  ;;  %v774_v18 = vsub.f32 %v762_v60, %v770_v26 }
 0x30b   : > { %v1438_v28 = vpop.eup %1437 }
 0x30c   : > { %v776_v27 = vmul.f32 1.442695, %v774_v18  ;;  %v498_v56 = vsel %vm485_vm8, %v1438_v28, 0.0 }
 0x30d   : > { %v773_v14 = vpop.xlane.xlu0 %772 }
 0x30e   : > { %1445 = vpow2.f32 %v776_v27  ;;  %v775_v29 = vsub.f32 %v765_v1, %v773_v14 }
 0x30f   : > { %v1440_v30 = vpop.eup %1439 }
 0x310   : > { %v778_v31 = vmul.f32 1.442695, %v775_v29  ;;  %v504_v32 = vpack.c.bf16 %v1440_v30, %v1438_v28  ;;  %v501_v58 = vsel %vm485_vm8, %v1440_v30, 0.0 }
 0x311   : > { %v913_v33 = vpop.xlane.xlu1 %912 }
 0x312   : > { %1447 = vpow2.f32 %v778_v31  ;;  %v917_v34 = vsub.f32 %v905_v5, %v913_v33  ;;  %1291 = vmatmul.mubr.msk.bf16.vlgmr.msra.gmra.mxu0 %vm485_vm8, %v504_v32  ;;  %v1434_v31 = vld [vmem:[#allocation9 + $0x8] sm:$0xff]  }
 0x313   : > { %v1442_v35 = vpop.eup %1441  ;;  %1302 = vmatprep.mubr.msk.bf16.mxu0 %vm1625_vm0, %v1624_v0  ;;  %1331 = vmatpush3.bf16.msra.mxu1 %v1434_v31 }
 0x314   : > { %v919_v36 = vmul.f32 1.442695, %v917_v34  ;;  %v637_v37 = vsel %vm485_vm8, %v1442_v35, 0.0  ;;  %v1435_v34 = vld [vmem:[#allocation9] sm:$0xff]   ;;  %1332 = vmatprep.subr.bf16.mxu1 %v1624_v0 }
 0x315   : > { %v916_v38 = vpop.xlane.xlu0 %915  ;;  %638 = vadd.xlane.f32.xlu0 %v637_v37  ;;  %v788_v47 = vpop.permute.xlu1 %787 }
 0x316   : > { %1449 = vpow2.f32 %v919_v36  ;;  %v918_v39 = vsub.f32 %v908_v9, %v916_v38 }
 0x317   : > { %v1444_v40 = vpop.eup %1443  ;;  %1333 = vmatpush3.bf16.msra.mxu1 %v1435_v34 }
 0x318   : > { %v921_v41 = vmul.f32 1.442695, %v918_v39  ;;  %v640_v42 = vsel %vm485_vm8, %v1444_v40, 0.0  ;;  %v643_v45 = vpack.c.bf16 %v1444_v40, %v1442_v35 }
 0x319   : > { %v645_v43 = vpop.permute.xlu0 %644  ;;  %641 = vadd.xlane.f32.xlu1 %v640_v42  ;;  %v931_v53 = vpop.permute.xlu1 %930 }
 0x31a   : > { %1451 = vpow2.f32 %v921_v41  ;;  %1301 = vmatpush3.bf16.msra.mxu0 %v645_v43 }
 0x31b   : > { %v1446_v44 = vpop.eup %1445  ;;  %1312 = vmatprep.subr.bf16.mxu0 %v1624_v0 }
 0x31c   : > { %v780_v46 = vsel %vm485_vm8, %v1446_v44, 0.0 }
 0x31d   : > { %1303 = vmatmul.mubr.msk.bf16.vlgmr.msra.gmra.mxu0 %vm485_vm8, %v643_v45  ;;  %781 = vadd.xlane.f32.xlu0 %v780_v46 }
 0x31e   : > { %1313 = vmatpush3.bf16.msra.mxu0 %v788_v47  ;;  %1314 = vmatprep.mubr.msk.bf16.mxu0 %vm1625_vm0, %v1624_v0 }
 0x31f   : > { %v1448_v48 = vpop.eup %1447  ;;  %1324 = vmatprep.subr.bf16.mxu0 %v1624_v0 }
 0x320   : > { %v783_v49 = vsel %vm485_vm8, %v1448_v48, 0.0  ;;  %v786_v51 = vpack.c.bf16 %v1448_v48, %v1446_v44 }
 0x321   : > { %784 = vadd.xlane.f32.xlu0 %v783_v49 }
 0x323   : > { %v1450_v50 = vpop.eup %1449 }
 0x324   : > { %v923_v52 = vsel %vm485_vm8, %v1450_v50, 0.0 }
 0x325   : > { %924 = vadd.xlane.f32.xlu1 %v923_v52  ;;  %1315 = vmatmul.mubr.msk.bf16.vlgmr.msra.gmra.mxu0 %vm485_vm8, %v786_v51  ;;  %v1230_v52 = vld [vmem:[%s1975_s5] ss:$0 sm:$0xff] }
 0x326   : > { %1325 = vmatpush3.bf16.msra.mxu0 %v931_v53  ;;  %1326 = vmatprep.mubr.msk.bf16.mxu0 %vm1625_vm0, %v1624_v0 }
 0x327   : > { %v1452_v54 = vpop.eup %1451 }
 0x328   : > { %v926_v55 = vsel %vm485_vm8, %v1452_v54, 0.0  ;;  %v929_v57 = vpack.c.bf16 %v1452_v54, %v1450_v50 }
 0x329   : > { %927 = vadd.xlane.f32.xlu0 %v926_v55  ;;  %499 = vadd.xlane.f32.xlu1 %v498_v56 }
 0x32d   : > { %502 = vadd.xlane.f32.xlu0 %v501_v58  ;;  %1327 = vmatmul.mubr.msk.bf16.vlgmr.msra.gmra.mxu0 %vm485_vm8, %v929_v57 }
 0x39e   : > { %v639_v59 = vpop.xlane.xlu0 %638 }
 0x3a2   : > { %v642_v61 = vpop.xlane.xlu1 %641 }
 0x3a6   : > { %v782_v60 = vpop.xlane.xlu0 %781 }
 0x3aa   : > { %v785_v62 = vpop.xlane.xlu0 %784 }
 0x3ae   : > { %v925_v63 = vpop.xlane.xlu1 %924 }
 0x3b2   : > { %v928_v1 = vpop.xlane.xlu0 %927  ;;  %v500_v2 = vpop.xlane.xlu1 %499 }
 0x3b3   : > { %1453 = vrcp.f32 %v500_v2 }
 0x3b6   : > { %v503_v3 = vpop.xlane.xlu0 %502 }
 0x3b7   : > { %1455 = vrcp.f32 %v503_v3 }
 0x3b8   : > { %1457 = vrcp.f32 %v639_v59 }
 0x3b9   : > { %1459 = vrcp.f32 %v642_v61 }
 0x3ba   : > { %1461 = vrcp.f32 %v782_v60 }
 0x3bb   : > { %1463 = vrcp.f32 %v785_v62 }
 0x3bc   : > { %1465 = vrcp.f32 %v925_v63 }
 0x3bd   : > { %1467 = vrcp.f32 %v928_v1 }
 0x3c0   : > { %v1454_v4 = vpop.eup %1453 }
 0x3c4   : > { %v1456_v9 = vpop.eup %1455 }
 0x3c5   : > { %v1458_v15 = vpop.eup %1457 }
 0x3c6   : > { %v1460_v22 = vpop.eup %1459 }
 0x3c7   : > { %v1462_v26 = vpop.eup %1461 }
 0x3c8   : > { %v1464_v29 = vpop.eup %1463 }
 0x3c9   : > { %v1466_v36 = vpop.eup %1465 }
 0x3ca   : > { %v1468_v41 = vpop.eup %1467 }
 0x3d2   : > { %v545_v5 = vpop.f32.mrf.mxu0 }
 0x3d3   : > { %v554_v6 = vmul.f32 %v1454_v4, %v545_v5 }
 0x3d4   : > { %v1292_v7 = vpop.f32.mrf.mxu0 }
 0x3d5   : > { %v1243_v8 = vpack.c.bf16 %v554_v6, %v554_v6 }
 0x3d6   : > { %v548_v10 = vpop.f32.mrf.mxu0 }
 0x3d7   : > { %565 = vst.msk [vmem:[#allocation3] sm:$0xf] %vm564_vm9, %v1243_v8  ;;  %v555_v11 = vmul.f32 %v1456_v9, %v548_v10 }
 0x3d8   : > { %v1293_v12 = vpop.f32.mrf.mxu0 }
 0x3d9   : > { %v1244_v13 = vpack.c.bf16 %v555_v11, %v555_v11 }
 0x3db   : > { %566 = vst.msk [vmem:[#allocation3 + $0x4] sm:$0xf] %vm564_vm9, %v1244_v13 }
 0x3dd   : > { %v684_v17 = vpop.f32.mrf.mxu0 }
 0x3de   : > { %v693_v19 = vmul.f32 %v1458_v15, %v684_v17 }
 0x3df   : > { %v1304_v20 = vpop.f32.mrf.mxu0 }
 0x3e0   : > { %v1245_v21 = vpack.c.bf16 %v693_v19, %v693_v19 }
 0x3e1   : > { %v687_v23 = vpop.f32.mrf.mxu0 }
 0x3e2   : > { %v694_v24 = vmul.f32 %v1460_v22, %v687_v23  ;;  %701 = vrot.lane.b32.xlu1 %v1245_v21, %s1638_s17 }
 0x3e3   : > { %v1305_v16 = vpop.f32.mrf.mxu0 }
 0x3e4   : > { %v1246_v25 = vpack.c.bf16 %v694_v24, %v694_v24 }
 0x3e5   : > { %v827_v18 = vpop.f32.mrf.mxu0 }
 0x3e6   : > { %v836_v27 = vmul.f32 %v1462_v26, %v827_v18  ;;  %703 = vrot.lane.b32.xlu0 %v1246_v25, %s1638_s17 }
 0x3e7   : > { %v1316_v14 = vpop.f32.mrf.mxu0 }
 0x3e8   : > { %v1247_v28 = vpack.c.bf16 %v836_v27, %v836_v27 }
 0x3e9   : > { %v830_v30 = vpop.f32.mrf.mxu0 }
 0x3ea   : > { %v837_v32 = vmul.f32 %v1464_v29, %v830_v30  ;;  %844 = vrot.lane.b32.xlu1 %v1247_v28, %s1639_s18 }
 0x3eb   : > { %v1317_v33 = vpop.f32.mrf.mxu0 }
 0x3ec   : > { %v1248_v35 = vpack.c.bf16 %v837_v32, %v837_v32 }
 0x3ed   : > { %v970_v37 = vpop.f32.mrf.mxu0 }
 0x3ee   : > { %v979_v38 = vmul.f32 %v1466_v36, %v970_v37  ;;  %846 = vrot.lane.b32.xlu1 %v1248_v35, %s1639_s18  ;;  %s1553_s18 = sshll.u32 %s1641_s25, 4  ;;  %s1554_s18 = int_to_ptr.vmem [resolvable:$false] %s1553_s18 }
 0x3ef   : > { %v1328_v39 = vpop.f32.mrf.mxu0  ;;  %p1556_p0 = scmp.lt.s32.totalorder %s1920_s11, %s1554_s18 }
 0x3f0   : > { %v1249_v40 = vpack.c.bf16 %v979_v38, %v979_v38 }
 0x3f1   : > { %v973_v42 = vpop.f32.mrf.mxu0 }
 0x3f2   : > { %v980_v43 = vmul.f32 %v1468_v41, %v973_v42  ;;  %987 = vrot.lane.b32.xlu0 %v1249_v40, %s1640_s20 }
 0x3f3   : > { %v1329_v44 = vpop.f32.mrf.mxu0 }
 0x3f4   : > { %v1250_v45 = vpack.c.bf16 %v980_v43, %v980_v43 }
 0x3f6   : > { %989 = vrot.lane.b32.xlu1 %v1250_v45, %s1640_s20  ;;  %s1555_s20 = scalar_lea.vmem %s1554_s18, 512 }
 0x3f7   : > { %p1557_p10 = scmp.lt.s32.totalorder %s1555_s20, %s1549_s15 }
 0x3f9   : > { %p1558_p3 = por %p1557_p10, %p1556_p0 }
 0x3fb   : > { %p1559_p11 = pnand %p1558_p3, %p1552_p13 }
 0x454   : > { %v702_v46 = vpop.permute.xlu1 %701 }
 0x455   : > { %708 = vst.msk [vmem:[#allocation3] sm:$0xf] %vm707_vm10, %v702_v46 }
 0x458   : > { %v704_v0 = vpop.permute.xlu0 %703 }
 0x459   : > { %709 = vst.msk [vmem:[#allocation3 + $0x4] sm:$0xf] %vm707_vm10, %v704_v0 }
 0x45c   : > { %v845_v47 = vpop.permute.xlu1 %844 }
 0x45d   : > { %851 = vst.msk [vmem:[#allocation3] sm:$0xf] %vm850_vm11, %v845_v47 }
 0x460   : > { %v847_v48 = vpop.permute.xlu1 %846 }
 0x461   : > { %852 = vst.msk [vmem:[#allocation3 + $0x4] sm:$0xf] %vm850_vm11, %v847_v48 }
 0x464   : > { %v988_v49 = vpop.permute.xlu0 %987 }
 0x465   : > { %994 = vst.msk [vmem:[#allocation3] sm:$0xf] %vm993_vm12, %v988_v49 }
 0x468   : > { %v990_v50 = vpop.permute.xlu1 %989 }
 0x469   : > { %995 = vst.msk [vmem:[#allocation3 + $0x4] sm:$0xf] %vm993_vm12, %v990_v50 }
 0x470   : > { %v1436_v51 = vld [vmem:[#allocation3] sm:$0xff]  }
 0x471   : > { %1335 = vmatmul.mubr.msk.bf16.vlgmr.msra.gmra.mxu1 %vm346_vm1, %v1436_v51 }
 0x531   : > { %v1063_v53 = vpop.f32.mrf.mxu1 }
 0x532   : > { %v1064_v54 = vadd.f32 %v1230_v52, %v1063_v53 }
 0x533   : > { %v1336_v55 = vpop.f32.mrf.mxu1 }
 0x534   : > { %1070 = vst.msk [vmem:[%s309_s26] sm:$0xff] %vm346_vm1, %v1064_v54 }
 0x535   : > { %v1066_v56 = vpop.f32.mrf.mxu1 }
 0x536   : > { %v1067_v57 = vadd.f32 %v1230_v52, %v1066_v56 }
 0x537   : > { %v1337_v58 = vpop.f32.mrf.mxu1 }
 0x538   : > { %1071 = vst.msk [vmem:[%s309_s26 + $0x8] sm:$0xff] %vm346_vm1, %v1067_v57 }
 0x539   : > { %1562 = shalt.err (!%p1559_p11)
}
 0x53a   : > { %s1563_s16 = scalar_lea.hbm %s1925_s27, 256  ;;  %s1567_s26 = scalar_lea.hbm %s1976_s6, 512 }
 0x53b   : > { %p1564_p9 = scmp.ne.s32.totalorder %s1925_s27, %s1563_s16  ;;  %p1568_p6 = scmp.lt.s32.totalorder %s1925_s27, %s1976_s6 }
 0x53c   : > { %p1569_p8 = scmp.lt.s32.totalorder %s1567_s26, %s1563_s16 }
 0x53d   : > { %p1565_p1 = pnand %p1564_p9, %p1995_p7 }
 0x53e   : > { %p1570_p5 = por %p1569_p8, %p1568_p6 }
 0x53f   : > { %p1566_p4 = pneg %p1565_p1 }
 0x541   : > { %p1571_p2 = pnand %p1570_p5, %p1566_p4 }
 0x543   : > { %1574 = shalt.err (!%p1571_p2)
}
 0x544   : > { %s1642_s14 = smov 128  }
 0x545   : > { %1348 = dma.vmem_to_hbm [thread:$0]  (%p1995_p7), %s1920_s11, 256, %s1925_s27, %s1073_s29, %s1642_s14, %s1642_s14, %s1638_s17  }
 0x546 PF: > { %s1101_s15 = sand.u32 1, %s1605_s21   ;;  %p1996_p12 = scmp.ne.s32.totalorder %s1984_s28, 0 }
 0x547   : > { %p1997_p13 = scmp.ge.s32.totalorder %s1617_s24, 2  ;;  %s1102_s25 = scalar_lea.sflag [#allocation6], %s1101_s15 }
 0x549   : > { %p1362_p0 = pnand %p1997_p13, %p1996_p12 }
 0x54b   : > { %p1363_p10 = pneg %p1362_p0 }
 0x54d   : > { %1600 = dma.done.wait (%p1363_p10), %s1102_s25, 256  }
 0x54e   : > { %1602 = vsyncadd (%p1363_p10), %s1102_s25, 4294967040  ;;  %p20_p3 = scmp.ge.s32.totalorder %s1756_s19, 4   ;;  %s1998_s21 = smov %s1609_s22 }
 0x54f   : > { %s1999_s22 = smov %s1613_s23  ;;  %s2000_s23 = smov %s1772_s7 }
 0x550   : > { %s2001_s24 = smov %s1756_s19  ;;  %22 = sbr.rel (!%p20_p3) target bundleno = 6 (0x6), region = 100 }
 0x555   :  { %1107 = vsyncpa [#allocation5], 1 }
 0x556   :  { %1109 = vsyncpa [#allocation5 + $0x1], 1 }
 0x557   :  { %1110 = vsyncpa [#allocation8], 1 }
 0x558   :  { %1111 = vsyncpa [#allocation6], 1 }
 0x559   :  { %1113 = vsyncpa [#allocation6 + $0x1], 1 }

</bundles_post_ra>
